<compile_context>
chip_gen: v6e
topology: v6e:2x2x1
jax: 0.10.0
libtpu: 0.0.40
codegen_flags: <defaults>
</compile_context>

<pallas_src>
import math
import functools

import jax
import jax.numpy as jnp
import numpy as np
from jax.experimental import pallas as pl
from jax.experimental.pallas import tpu as pltpu


# ---------------------------------------------------------------------------
# Helpers
# ---------------------------------------------------------------------------
def _pick_time_block(seq_len, max_tb=8):
    for tb in range(min(max_tb, seq_len), 0, -1):
        if seq_len % tb == 0:
            return tb
    return 1


def _row_tile(m, target=256):
    """Bounded row tile + padded row count (never falls back to full extent)."""
    if m >= target:
        tm = target
    else:
        tm = ((m + 7) // 8) * 8
    m_pad = ((m + tm - 1) // tm) * tm
    return tm, m_pad


def _col_tile(v):
    for c in (512, 256, 128):
        if v % c == 0:
            return c
    return v  # small vocab: full extent


def _pad_rows(x, m_pad):
    m = x.shape[0]
    if m == m_pad:
        return x
    pad = [(0, m_pad - m)] + [(0, 0)] * (x.ndim - 1)
    return jnp.pad(x, pad)


def _vmem_limit_bytes(blocks):
    """Budget from actual resident block bytes (x3 for double-buffer + headroom)."""
    total = 0
    for shape, dtype in blocks:
        n = 1
        for d in shape:
            n *= int(d)
        total += n * np.dtype(dtype).itemsize
    need = total * 3 + (2 << 20)
    return int(min(max(need, 16 << 20), 48 << 20))


# ---------------------------------------------------------------------------
# Kernel 1: layer-0 input projection, hoisted out of the recurrence (parallel).
#   gr = x @ Wrx + br ; gz = x @ Wzx + bz ; gh = x @ Whx + bh
# ---------------------------------------------------------------------------
def _input_proj_kernel(x_ref, wr_ref, br_ref, wz_ref, bz_ref, wh_ref, bh_ref,
                       gr_ref, gz_ref, gh_ref):
    f32 = jnp.float32
    x = x_ref[...].astype(wr_ref.dtype)
    gr_ref[...] = (jnp.dot(x, wr_ref[...], preferred_element_type=f32)
                   + br_ref[...]).astype(gr_ref.dtype)
    gz_ref[...] = (jnp.dot(x, wz_ref[...], preferred_element_type=f32)
                   + bz_ref[...]).astype(gz_ref.dtype)
    gh_ref[...] = (jnp.dot(x, wh_ref[...], preferred_element_type=f32)
                   + bh_ref[...]).astype(gh_ref.dtype)


def _layer0_input_projection(x_flat, wrx, br, wzx, bz, whx, bh, compute_dtype):
    M, E = x_flat.shape
    H = wrx.shape[1]
    tm, m_pad = _row_tile(M)
    x_pad = _pad_rows(x_flat, m_pad)
    wrx_c, wzx_c, whx_c = (w.astype(compute_dtype) for w in (wrx, wzx, whx))

    blocks = ([((tm, E), jnp.float32)]
              + [((E, H), compute_dtype)] * 3
              + [((1, H), jnp.float32)] * 3
              + [((tm, H), jnp.float32)] * 3)

    gr, gz, gh = pl.pallas_call(
        _input_proj_kernel,
        out_shape=tuple(jax.ShapeDtypeStruct((m_pad, H), jnp.float32) for _ in range(3)),
        grid_spec=pltpu.PrefetchScalarGridSpec(
            num_scalar_prefetch=0,
            grid=(m_pad // tm,),
            in_specs=[
                pl.BlockSpec((tm, E), lambda i: (i, 0)),
                pl.BlockSpec((E, H), lambda i: (0, 0)),
                pl.BlockSpec((1, H), lambda i: (0, 0)),
                pl.BlockSpec((E, H), lambda i: (0, 0)),
                pl.BlockSpec((1, H), lambda i: (0, 0)),
                pl.BlockSpec((E, H), lambda i: (0, 0)),
                pl.BlockSpec((1, H), lambda i: (0, 0)),
            ],
            out_specs=tuple(pl.BlockSpec((tm, H), lambda i: (i, 0)) for _ in range(3)),
        ),
        compiler_params=pltpu.CompilerParams(
            dimension_semantics=("parallel",),
            vmem_limit_bytes=_vmem_limit_bytes(blocks),
        ),
    )(x_pad, wrx_c, br, wzx_c, bz, whx_c, bh)
    return gr[:M], gz[:M], gh[:M]


# ---------------------------------------------------------------------------
# Kernel 2: recurrent kernel.  grid = (S // TB,) over time blocks (sequential,
# "arbitrary").  Only h-dependent dots on the critical path; no concats; weight
# loads and bias broadcasts hoisted out of the unroll; hidden state carried in
# registers across the block and written back once per grid step.
# ---------------------------------------------------------------------------
def _gru_recurrent_kernel(num_layers, time_block,
                          gr_ref, gz_ref, gh_ref, h0_ref, *refs):
    f32 = jnp.float32
    n_w = 3 + 9 * (num_layers - 1)
    w_refs = refs[:n_w]
    top_ref = refs[n_w]          # (TB, B, H) top-layer hidden states for this block
    hstate_ref = refs[n_w + 1]   # (L, B, H)  running hidden state (constant-index out)
    L, B, H = hstate_ref.shape

    @pl.when(pl.program_id(0) == 0)
    def _():
        hstate_ref[...] = h0_ref[...].astype(f32)

    # --- Hoist all weight loads / bias broadcasts out of the TB x L unroll ---
    wrh0 = w_refs[0][...]
    wzh0 = w_refs[1][...]
    whh0 = w_refs[2][...]
    mxu = wrh0.dtype
    deep = []
    for j in range(1, num_layers):
        base = 3 + 9 * (j - 1)
        w_rx, w_rh = w_refs[base][...], w_refs[base + 1][...]
        b_r = jnp.broadcast_to(w_refs[base + 2][...], (B, H)).astype(f32)
        w_zx, w_zh = w_refs[base + 3][...], w_refs[base + 4][...]
        b_z = jnp.broadcast_to(w_refs[base + 5][...], (B, H)).astype(f32)
        w_hx, w_hh = w_refs[base + 6][...], w_refs[base + 7][...]
        b_h = jnp.broadcast_to(w_refs[base + 8][...], (B, H)).astype(f32)
        deep.append((w_rx, w_rh, b_r, w_zx, w_zh, b_z, w_hx, w_hh, b_h))

    hs = [hstate_ref[j] for j in range(num_layers)]   # registers across the block
    outs = []
    # NOTE: for realistic S/B/H replace this static unroll with
    # lax.fori_loop(..., unroll=True) to bound live ranges; TB is capped here.
    for s in range(time_block):
        # ---- layer 0: x-side gate pre-activations (+ biases) precomputed ----
        h_prev = hs[0]
        hm = h_prev.astype(mxu)
        r = jax.nn.sigmoid(gr_ref[s]
                           + jnp.dot(hm, wrh0, preferred_element_type=f32))
        z = jax.nn.sigmoid(gz_ref[s]
                           + jnp.dot(hm, wzh0, preferred_element_type=f32))
        hd = jnp.tanh(gh_ref[s]
                      + jnp.dot((r * h_prev).astype(mxu), whh0,
                                preferred_element_type=f32))
        x = (1.0 - z) * h_prev + z * hd
        hs[0] = x

        # ---- deeper layers: split dots (no concat), separate r/z matmuls ----
        for j in range(1, num_layers):
            w_rx, w_rh, b_r, w_zx, w_zh, b_z, w_hx, w_hh, b_h = deep[j - 1]
            h_prev = hs[j]
            xm = x.astype(mxu)
            hm = h_prev.astype(mxu)
            r = jax.nn.sigmoid(jnp.dot(xm, w_rx, preferred_element_type=f32)
                               + jnp.dot(hm, w_rh, preferred_element_type=f32) + b_r)
            z = jax.nn.sigmoid(jnp.dot(xm, w_zx, preferred_element_type=f32)
                               + jnp.dot(hm, w_zh, preferred_element_type=f32) + b_z)
            hd = jnp.tanh(jnp.dot(xm, w_hx, preferred_element_type=f32)
                          + jnp.dot((r * h_prev).astype(mxu), w_hh,
                                    preferred_element_type=f32) + b_h)
            x = (1.0 - z) * h_prev + z * hd
            hs[j] = x
        outs.append(x)

    # Single whole-block stores (instead of TB / L narrow per-step stores).
    top_ref[...] = jnp.stack(outs, 0).astype(top_ref.dtype)
    hstate_ref[...] = jnp.stack(hs, 0).astype(hstate_ref.dtype)


# ---------------------------------------------------------------------------
# Kernel 3: vocab projection, vocab axis outer / M axis inner (w_out streamed once).
# ---------------------------------------------------------------------------
def _proj_kernel(h_ref, w_ref, b_ref, o_ref):
    h = h_ref[...].astype(w_ref.dtype)
    o_ref[...] = (jnp.dot(h, w_ref[...], preferred_element_type=jnp.float32)
                  + b_ref[...]).astype(o_ref.dtype)


def _output_projection(h_flat, w_out, b_out, compute_dtype):
    M, H = h_flat.shape
    V = w_out.shape[1]
    tm, m_pad = _row_tile(M)
    tn = _col_tile(V)
    h_pad = _pad_rows(h_flat, m_pad)
    w_c = w_out.astype(compute_dtype)

    blocks = [((tm, H), jnp.float32), ((H, tn), compute_dtype),
              ((1, tn), jnp.float32), ((tm, tn), jnp.float32)]

    logits = pl.pallas_call(
        _proj_kernel,
        out_shape=jax.ShapeDtypeStruct((m_pad, V), jnp.float32),
        grid_spec=pltpu.PrefetchScalarGridSpec(
            num_scalar_prefetch=0,
            # Vocab axis OUTER, M inner (fast): w_out's block index is constant over
            # the fast axis, so the large operand is fetched from HBM only once.
            grid=(V // tn, m_pad // tm),
            in_specs=[
                pl.BlockSpec((tm, H), lambda j, i: (i, 0)),
                pl.BlockSpec((H, tn), lambda j, i: (0, j)),
                pl.BlockSpec((1, tn), lambda j, i: (0, j)),
            ],
            out_specs=pl.BlockSpec((tm, tn), lambda j, i: (i, j)),
        ),
        compiler_params=pltpu.CompilerParams(
            dimension_semantics=("parallel", "parallel"),
            vmem_limit_bytes=_vmem_limit_bytes(blocks),
        ),
    )(h_pad, w_c, b_out)
    return logits[:M]


# ---------------------------------------------------------------------------
# Full forward
# ---------------------------------------------------------------------------
def gru_forward_pallas(embedded, h0, layer_params, w_out, b_out,
                       compute_dtype=jnp.float32, max_time_block=8):
    """embedded: (S, B, E) f32; h0: (L, B, H) f32.
    Returns (logits (S, B, V) f32, h_final (L, B, H) f32)."""
    S, B, E = embedded.shape
    L, _, H = h0.shape
    V = w_out.shape[1]
    tb = _pick_time_block(S, max_time_block)

    # 1) Hoist layer-0 input projections (all timesteps) off the sequential path.
    wrx0, wrh0, br0, wzx0, wzh0, bz0, whx0, whh0, bh0 = layer_params[0]
    gr, gz, gh = _layer0_input_projection(embedded.reshape(S * B, E),
                                          wrx0, br0, wzx0, bz0, whx0, bh0,
                                          compute_dtype)
    gr = gr.reshape(S, B, H)
    gz = gz.reshape(S, B, H)
    gh = gh.reshape(S, B, H)

    # 2) Recurrent kernel: only h-dependent dots inside.
    flat_weights = [wrh0.astype(compute_dtype),
                    wzh0.astype(compute_dtype),
                    whh0.astype(compute_dtype)]
    for (wrx, wrh, br, wzx, wzh, bz, whx, whh, bh) in layer_params[1:]:
        flat_weights.extend([
            wrx.astype(compute_dtype), wrh.astype(compute_dtype), br.astype(jnp.float32),
            wzx.astype(compute_dtype), wzh.astype(compute_dtype), bz.astype(jnp.float32),
            whx.astype(compute_dtype), whh.astype(compute_dtype), bh.astype(jnp.float32),
        ])

    in_specs = [
        pl.BlockSpec((tb, B, H), lambda t: (t, 0, 0)),   # gr
        pl.BlockSpec((tb, B, H), lambda t: (t, 0, 0)),   # gz
        pl.BlockSpec((tb, B, H), lambda t: (t, 0, 0)),   # gh
        pl.BlockSpec((L, B, H), lambda t: (0, 0, 0)),    # h0 (constant)
    ]
    blocks = [((tb, B, H), jnp.float32)] * 3 + [((L, B, H), jnp.float32)]
    for w in flat_weights:
        # Constant-index weight blocks (VMEM-resident across the sequence).
        # v7x at large H/L: add pipeline_mode=pl.Buffered(1) here to avoid
        # double-buffering the resident weights (plus bf16 compute_dtype).
        in_specs.append(pl.BlockSpec(w.shape, lambda t, n=w.ndim: (0,) * n))
        blocks.append((w.shape, w.dtype))
    blocks += [((tb, B, H), jnp.float32), ((L, B, H), jnp.float32)]

    out_shapes = (jax.ShapeDtypeStruct((S, B, H), jnp.float32),
                  jax.ShapeDtypeStruct((L, B, H), jnp.float32))
    out_specs = (
        pl.BlockSpec((tb, B, H), lambda t: (t, 0, 0)),
        # Constant block index across the (sequential) time axis => VMEM-resident
        # running hidden state.  Time axis MUST stay "arbitrary" (single core).
        # TODO(synk): v7x 2nd TensorCore — add a "parallel" batch grid axis and block
        # gr/gz/gh/h0/top/hstate over batch so each core owns its own state.
        pl.BlockSpec((L, B, H), lambda t: (0, 0, 0)),
    )

    kernel = functools.partial(_gru_recurrent_kernel, L, tb)
    top_h, h_final = pl.pallas_call(
        kernel,
        out_shape=out_shapes,
        grid_spec=pltpu.PrefetchScalarGridSpec(
            num_scalar_prefetch=0,
            grid=(S // tb,),
            in_specs=in_specs,
            out_specs=out_specs,
        ),
        compiler_params=pltpu.CompilerParams(
            dimension_semantics=("arbitrary",),          # sequential recurrence
            vmem_limit_bytes=_vmem_limit_bytes(blocks),
        ),
    )(gr, gz, gh, h0, *flat_weights)

    # 3) Vocab projection (parallel, vocab-outer grid).
    logits_flat = _output_projection(top_h.reshape(S * B, H), w_out, b_out,
                                     compute_dtype)
    return logits_flat.reshape(S, B, V), h_final


# ---------------------------------------------------------------------------
# Pure-JAX reference (matches the PyTorch forward; dropout = identity).
# ---------------------------------------------------------------------------
def gru_forward_ref(embedded, h0, layer_params, w_out, b_out):
    S = embedded.shape[0]
    h = h0
    logits = []
    for t in range(S):
        x = embedded[t]
        hs = []
        for j, (wrx, wrh, br, wzx, wzh, bz, whx, whh, bh) in enumerate(layer_params):
            hj = h[j]
            r = jax.nn.sigmoid(x @ wrx + hj @ wrh + br)
            z = jax.nn.sigmoid(x @ wzx + hj @ wzh + bz)
            hd = jnp.tanh(x @ whx + (r * hj) @ whh + bh)
            hj = (1.0 - z) * hj + z * hd
            hs.append(hj)
            x = hj
        h = jnp.stack(hs, 0)
        logits.append(x @ w_out + b_out)
    return jnp.stack(logits, 0), h


def init_params(key, emb_size, hidden_size, vocab_size, num_layers):
    """Deterministic init mirroring GRU.init_weights_uniform (torch Linear y = x W^T + b
    realized as x @ W with W split into x- and h-parts)."""
    keys = jax.random.split(key, 2 + 6 * num_layers)
    ki = iter(keys)
    emb_table = jax.random.uniform(next(ki), (vocab_size, emb_size), jnp.float32, -0.1, 0.1)
    w_out = jax.random.uniform(next(ki), (hidden_size, vocab_size), jnp.float32, -0.1, 0.1)
    b_out = jnp.zeros((1, vocab_size), jnp.float32)

    k = 1.0 / math.sqrt(hidden_size)
    layer_params = []
    for j in range(num_layers):
        in_size = emb_size if j == 0 else hidden_size
        wr = jax.random.uniform(next(ki), (in_size + hidden_size, hidden_size), jnp.float32, -k, k)
        br = jax.random.uniform(next(ki), (1, hidden_size), jnp.float32, -k, k)
        wz = jax.random.uniform(next(ki), (in_size + hidden_size, hidden_size), jnp.float32, -k, k)
        bz = jax.random.uniform(next(ki), (1, hidden_size), jnp.float32, -k, k)
        wh = jax.random.uniform(next(ki), (in_size + hidden_size, hidden_size), jnp.float32, -k, k)
        bh = jax.random.uniform(next(ki), (1, hidden_size), jnp.float32, -k, k)
        layer_params.append(
            (wr[:in_size], wr[in_size:], br,
             wz[:in_size], wz[in_size:], bz,
             wh[:in_size], wh[in_size:], bh)
        )
    return emb_table, w_out, b_out, layer_params


if __name__ == "__main__":
    # Small shapes implied by the module: (seq_len, batch) token inputs.
    emb_size = 32
    hidden_size = 32
    seq_len = 8
    batch_size = 8
    vocab_size = 128
    num_layers = 2
    # dp_keep_prob = 1.0 -> dropout is identity

    root = jax.random.PRNGKey(0)
    k_param, k_tok = jax.random.split(root)
    emb_table, w_out, b_out, layer_params = init_params(
        k_param, emb_size, hidden_size, vocab_size, num_layers
    )

    tokens = jax.random.randint(k_tok, (seq_len, batch_size), 0, vocab_size, jnp.int32)
    embedded = emb_table[tokens]                                         # (S, B, E) — glue gather
    h0 = jnp.zeros((num_layers, batch_size, hidden_size), jnp.float32)   # init_hidden()

    logits_ref, h_ref = gru_forward_ref(embedded, h0, layer_params, w_out, b_out)

    # f32 path: tight check against the reference.
    logits, h_final = gru_forward_pallas(embedded, h0, layer_params, w_out, b_out,
                                         compute_dtype=jnp.float32)
    jax.block_until_ready((logits, h_final))
    np.testing.assert_allclose(np.asarray(logits), np.asarray(logits_ref), rtol=2e-3, atol=2e-3)
    np.testing.assert_allclose(np.asarray(h_final), np.asarray(h_ref), rtol=2e-3, atol=2e-3)
    assert logits.shape == (seq_len, batch_size, vocab_size)
    assert h_final.shape == (num_layers, batch_size, hidden_size)

    # bf16 MXU path (f32 accumulation + f32 gate math): loose check.
    logits_bf, h_bf = gru_forward_pallas(embedded, h0, layer_params, w_out, b_out,
                                         compute_dtype=jnp.bfloat16)
    jax.block_until_ready((logits_bf, h_bf))
    np.testing.assert_allclose(np.asarray(logits_bf), np.asarray(logits_ref), rtol=1e-1, atol=1e-1)
    np.testing.assert_allclose(np.asarray(h_bf), np.asarray(h_ref), rtol=1e-1, atol=1e-1)

    print("KERNEL_OK")
</pallas_src>

<mosaic_0001>
module attributes {stable_mosaic.version = 11 : i64} {
  func.func @_input_proj_kernel(%arg0: i32, %arg1: memref<64x32xf32, #tpu.memory_space<vmem>>, %arg2: memref<32x32xf32, #tpu.memory_space<vmem>>, %arg3: memref<1x32xf32, #tpu.memory_space<vmem>>, %arg4: memref<32x32xf32, #tpu.memory_space<vmem>>, %arg5: memref<1x32xf32, #tpu.memory_space<vmem>>, %arg6: memref<32x32xf32, #tpu.memory_space<vmem>>, %arg7: memref<1x32xf32, #tpu.memory_space<vmem>>, %arg8: memref<64x32xf32, #tpu.memory_space<vmem>>, %arg9: memref<64x32xf32, #tpu.memory_space<vmem>>, %arg10: memref<64x32xf32, #tpu.memory_space<vmem>>) attributes {dimension_semantics = [#tpu.dimension_semantics<parallel>], iteration_bounds = array<i64: 1>, scalar_prefetch = 0 : i64, scratch_operands = 0 : i64, tpu.core_type = #tpu.core_type<tc>, window_params = [{transform_indices = @transform_0, window_bounds = array<i64: 64, 32>}, {pipeline_mode = #tpu.pipeline_mode<synchronous>, transform_indices = @transform_1, window_bounds = array<i64: 32, 32>}, {pipeline_mode = #tpu.pipeline_mode<synchronous>, transform_indices = @transform_2, window_bounds = array<i64: 1, 32>}, {pipeline_mode = #tpu.pipeline_mode<synchronous>, transform_indices = @transform_3, window_bounds = array<i64: 32, 32>}, {pipeline_mode = #tpu.pipeline_mode<synchronous>, transform_indices = @transform_4, window_bounds = array<i64: 1, 32>}, {pipeline_mode = #tpu.pipeline_mode<synchronous>, transform_indices = @transform_5, window_bounds = array<i64: 32, 32>}, {pipeline_mode = #tpu.pipeline_mode<synchronous>, transform_indices = @transform_6, window_bounds = array<i64: 1, 32>}, {transform_indices = @transform_7, window_bounds = array<i64: 64, 32>}, {transform_indices = @transform_8, window_bounds = array<i64: 64, 32>}, {transform_indices = @transform_9, window_bounds = array<i64: 64, 32>}]} {
    %c0 = arith.constant 0 : index
    %c0_0 = arith.constant 0 : index
    %0 = vector.load %arg1[%c0, %c0_0] : memref<64x32xf32, #tpu.memory_space<vmem>>, vector<64x32xf32>
    %c0_1 = arith.constant 0 : index
    %c0_2 = arith.constant 0 : index
    %1 = vector.load %arg2[%c0_1, %c0_2] : memref<32x32xf32, #tpu.memory_space<vmem>>, vector<32x32xf32>
    %cst = arith.constant dense<0.000000e+00> : vector<64x32xf32>
    %2 = tpu.matmul %0, %1, %cst {dimension_numbers = #tpu.dot_dimension_numbers<[1], [0], [0], [1], [0, 0, 1, 1], [], []>} : vector<64x32xf32>, vector<32x32xf32>, vector<64x32xf32> -> vector<64x32xf32>
    %c0_3 = arith.constant 0 : index
    %c0_4 = arith.constant 0 : index
    %3 = vector.load %arg3[%c0_3, %c0_4] : memref<1x32xf32, #tpu.memory_space<vmem>>, vector<1x32xf32>
    %4 = vector.broadcast %3 : vector<1x32xf32> to vector<64x32xf32>
    %5 = arith.addf %2, %4 : vector<64x32xf32>
    %c0_5 = arith.constant 0 : index
    %c0_6 = arith.constant 0 : index
    %6 = vector.load %arg8[%c0_5, %c0_6] : memref<64x32xf32, #tpu.memory_space<vmem>>, vector<64x32xf32>
    tpu.vector_store %arg8[%c0_5, %c0_6], %5 {strides = array<i32>} : memref<64x32xf32, #tpu.memory_space<vmem>>, vector<64x32xf32>,
    %c0_7 = arith.constant 0 : index
    %c0_8 = arith.constant 0 : index
    %7 = vector.load %arg4[%c0_7, %c0_8] : memref<32x32xf32, #tpu.memory_space<vmem>>, vector<32x32xf32>
    %cst_9 = arith.constant dense<0.000000e+00> : vector<64x32xf32>
    %8 = tpu.matmul %0, %7, %cst_9 {dimension_numbers = #tpu.dot_dimension_numbers<[1], [0], [0], [1], [0, 0, 1, 1], [], []>} : vector<64x32xf32>, vector<32x32xf32>, vector<64x32xf32> -> vector<64x32xf32>
    %c0_10 = arith.constant 0 : index
    %c0_11 = arith.constant 0 : index
    %9 = vector.load %arg5[%c0_10, %c0_11] : memref<1x32xf32, #tpu.memory_space<vmem>>, vector<1x32xf32>
    %10 = vector.broadcast %9 : vector<1x32xf32> to vector<64x32xf32>
    %11 = arith.addf %8, %10 : vector<64x32xf32>
    %c0_12 = arith.constant 0 : index
    %c0_13 = arith.constant 0 : index
    %12 = vector.load %arg9[%c0_12, %c0_13] : memref<64x32xf32, #tpu.memory_space<vmem>>, vector<64x32xf32>
    tpu.vector_store %arg9[%c0_12, %c0_13], %11 {strides = array<i32>} : memref<64x32xf32, #tpu.memory_space<vmem>>, vector<64x32xf32>,
    %c0_14 = arith.constant 0 : index
    %c0_15 = arith.constant 0 : index
    %13 = vector.load %arg6[%c0_14, %c0_15] : memref<32x32xf32, #tpu.memory_space<vmem>>, vector<32x32xf32>
    %cst_16 = arith.constant dense<0.000000e+00> : vector<64x32xf32>
    %14 = tpu.matmul %0, %13, %cst_16 {dimension_numbers = #tpu.dot_dimension_numbers<[1], [0], [0], [1], [0, 0, 1, 1], [], []>} : vector<64x32xf32>, vector<32x32xf32>, vector<64x32xf32> -> vector<64x32xf32>
    %c0_17 = arith.constant 0 : index
    %c0_18 = arith.constant 0 : index
    %15 = vector.load %arg7[%c0_17, %c0_18] : memref<1x32xf32, #tpu.memory_space<vmem>>, vector<1x32xf32>
    %16 = vector.broadcast %15 : vector<1x32xf32> to vector<64x32xf32>
    %17 = arith.addf %14, %16 : vector<64x32xf32>
    %c0_19 = arith.constant 0 : index
    %c0_20 = arith.constant 0 : index
    %18 = vector.load %arg10[%c0_19, %c0_20] : memref<64x32xf32, #tpu.memory_space<vmem>>, vector<64x32xf32>
    tpu.vector_store %arg10[%c0_19, %c0_20], %17 {strides = array<i32>} : memref<64x32xf32, #tpu.memory_space<vmem>>, vector<64x32xf32>,
    return
  }
  func.func @transform_0(%arg0: i32) -> (i32, i32) {
    %c0_i32 = arith.constant 0 : i32
    %c0_i32_0 = arith.constant 0 : i32
    return %arg0, %c0_i32 : i32, i32
  }
  func.func @transform_1(%arg0: i32) -> (i32, i32) {
    %c0_i32 = arith.constant 0 : i32
    %c0_i32_0 = arith.constant 0 : i32
    %c0_i32_1 = arith.constant 0 : i32
    return %c0_i32, %c0_i32_0 : i32, i32
  }
  func.func @transform_2(%arg0: i32) -> (i32, i32) {
    %c0_i32 = arith.constant 0 : i32
    %c0_i32_0 = arith.constant 0 : i32
    %c0_i32_1 = arith.constant 0 : i32
    return %c0_i32, %c0_i32_0 : i32, i32
  }
  func.func @transform_3(%arg0: i32) -> (i32, i32) {
    %c0_i32 = arith.constant 0 : i32
    %c0_i32_0 = arith.constant 0 : i32
    %c0_i32_1 = arith.constant 0 : i32
    return %c0_i32, %c0_i32_0 : i32, i32
  }
  func.func @transform_4(%arg0: i32) -> (i32, i32) {
    %c0_i32 = arith.constant 0 : i32
    %c0_i32_0 = arith.constant 0 : i32
    %c0_i32_1 = arith.constant 0 : i32
    return %c0_i32, %c0_i32_0 : i32, i32
  }
  func.func @transform_5(%arg0: i32) -> (i32, i32) {
    %c0_i32 = arith.constant 0 : i32
    %c0_i32_0 = arith.constant 0 : i32
    %c0_i32_1 = arith.constant 0 : i32
    return %c0_i32, %c0_i32_0 : i32, i32
  }
  func.func @transform_6(%arg0: i32) -> (i32, i32) {
    %c0_i32 = arith.constant 0 : i32
    %c0_i32_0 = arith.constant 0 : i32
    %c0_i32_1 = arith.constant 0 : i32
    return %c0_i32, %c0_i32_0 : i32, i32
  }
  func.func @transform_7(%arg0: i32) -> (i32, i32) {
    %c0_i32 = arith.constant 0 : i32
    %c0_i32_0 = arith.constant 0 : i32
    return %arg0, %c0_i32 : i32, i32
  }
  func.func @transform_8(%arg0: i32) -> (i32, i32) {
    %c0_i32 = arith.constant 0 : i32
    %c0_i32_0 = arith.constant 0 : i32
    return %arg0, %c0_i32 : i32, i32
  }
  func.func @transform_9(%arg0: i32) -> (i32, i32) {
    %c0_i32 = arith.constant 0 : i32
    %c0_i32_0 = arith.constant 0 : i32
    return %arg0, %c0_i32 : i32, i32
  }
}

</mosaic_0001>

<bundles_post_ra>
// kernel: tpu_custom_call.1
= control target key start
LH: loop header
LB: loop body
LE: loop exit
PB: predicated region body
PF: predicated region fallthrough
CT: control target
= control target key end

     0   :  { %vm48_vm0 = vcmask 261120   ;;  %s816_s1 = inlined_call_operand.vmem [shape: f32[32,32], index: 1, kind: input, shape index: {}]   ;;  %s817_s0 = inlined_call_operand.vmem [shape: f32[64,32], index: 0, kind: input, shape index: {}]   ;;  %s818_s3 = inlined_call_operand.vmem [shape: f32[32,32], index: 3, kind: input, shape index: {}]   ;;  %s819_s5 = inlined_call_operand.vmem [shape: f32[32,32], index: 5, kind: input, shape index: {}]   ;;  %s820_s2 = inlined_call_operand.vmem [shape: f32[1,32], index: 2, kind: input, shape index: {}]   ;;  %s821_s7 = inlined_call_operand.vmem [shape: f32[64,32], index: 7, kind: output, shape index: {0}]   ;;  %s822_s4 = inlined_call_operand.vmem [shape: f32[1,32], index: 4, kind: input, shape index: {}]   ;;  %s823_s6 = inlined_call_operand.vmem [shape: f32[1,32], index: 6, kind: input, shape index: {}]   ;;  %s824_s8 = inlined_call_operand.vmem [shape: f32[64,32], index: 8, kind: output, shape index: {1}]   ;;  %s825_s9 = inlined_call_operand.vmem [shape: f32[64,32], index: 9, kind: output, shape index: {2}]  }
   0x1   :  { %v40_v0 = vld [vmem:[%s816_s1 + $0x18] sm:$0xff]  ;;  %v39_v1 = vld [vmem:[%s816_s1 + $0x10] sm:$0xff]  ;;  %v38_v2 = vld [vmem:[%s816_s1 + $0x8] sm:$0xff] }
   0x2   :  { %509 = vmatprep.subr.mxu0 %v40_v0  ;;  %569 = vmatprep.subr.mxu1 %v40_v0  ;;  %v37_v3 = vld [vmem:[%s816_s1] sm:$0xff]  ;;  %v30_v6 = vld [vmem:[%s817_s0 + $0x8] sm:$0xff]  ;;  %v189_v8 = vld [vmem:[%s818_s3 + $0x18] sm:$0xff] }
   0x3   :  { %510 = vmatpush3.msra.mxu0 %v40_v0  ;;  %573 = vmatpush3.msra.mxu1 %v40_v0  ;;  %v29_v4 = vld [vmem:[%s817_s0] sm:$0xff]  ;;  %v34_v7 = vld [vmem:[%s817_s0 + $0x28] sm:$0xff]  ;;  %v313_v9 = vld [vmem:[%s819_s5 + $0x18] sm:$0xff] }
   0x4   :  { %511 = vmatprep.subr.mxu0 %v39_v1  ;;  %570 = vmatprep.subr.mxu1 %v39_v1  ;;  %v33_v5 = vld [vmem:[%s817_s0 + $0x20] sm:$0xff]  ;;  %v188_v10 = vld [vmem:[%s818_s3 + $0x10] sm:$0xff]  ;;  %v32_v14 = vld [vmem:[%s817_s0 + $0x18] sm:$0xff] }
   0x5   :  { %512 = vmatpush3.msra.mxu0 %v39_v1  ;;  %574 = vmatpush3.msra.mxu1 %v39_v1  ;;  %v312_v11 = vld [vmem:[%s819_s5 + $0x10] sm:$0xff]  ;;  %v36_v15 = vld [vmem:[%s817_s0 + $0x38] sm:$0xff]  ;;  %v187_v16 = vld [vmem:[%s818_s3 + $0x8] sm:$0xff] }
   0x6   :  { %513 = vmatprep.subr.mxu0 %v38_v2  ;;  %571 = vmatprep.subr.mxu1 %v38_v2  ;;  %v31_v12 = vld [vmem:[%s817_s0 + $0x10] sm:$0xff]  ;;  %v311_v17 = vld [vmem:[%s819_s5 + $0x8] sm:$0xff]  ;;  %v186_v18 = vld [vmem:[%s818_s3] sm:$0xff] }
   0x7   :  { %514 = vmatpush3.msra.mxu0 %v38_v2  ;;  %575 = vmatpush3.msra.mxu1 %v38_v2  ;;  %v35_v13 = vld [vmem:[%s817_s0 + $0x30] sm:$0xff]  ;;  %v310_v19 = vld [vmem:[%s819_s5] sm:$0xff] }
   0x8   :  { %515 = vmatprep.subr.mxu0 %v37_v3  ;;  %572 = vmatprep.subr.mxu1 %v37_v3  ;;  %v446_v20 = vld [vmem:[%s820_s2] ss:$0 sm:$0xff] }
   0x9   :  { %516 = vmatpush3.msra.mxu0 %v37_v3  ;;  %576 = vmatpush3.msra.mxu1 %v37_v3  ;;  %v455_v37 = vld [vmem:[%s822_s4] ss:$0 sm:$0xff] }
   0xa   :  { %517 = vmatprep.mubr.msk.f32.mxu0 %vm48_vm0, %v29_v4  ;;  %523 = vmatprep.mubr.msk.f32.mxu1 %vm48_vm0, %v33_v5  ;;  %v464_v38 = vld [vmem:[%s823_s6] ss:$0 sm:$0xff] }
   0xb   :  { %518 = vmatmul.mubr.msk.f32.vlgmr.msra.gmra.mxu0 %vm48_vm0, %v30_v6  ;;  %524 = vmatmul.mubr.msk.f32.vlgmr.msra.gmra.mxu1 %vm48_vm0, %v34_v7 }
   0xc   :  { %529 = vmatprep.subr.mxu1 %v189_v8  ;;  %549 = vmatprep.subr.mxu0 %v313_v9 }
   0xd   :  { %530 = vmatpush3.msra.mxu1 %v189_v8  ;;  %550 = vmatpush3.msra.mxu0 %v313_v9 }
   0xe   :  { %531 = vmatprep.subr.mxu1 %v188_v10  ;;  %551 = vmatprep.subr.mxu0 %v312_v11 }
   0xf   :  { %520 = vmatprep.mubr.msk.f32.mxu0 %vm48_vm0, %v31_v12  ;;  %526 = vmatprep.mubr.msk.f32.mxu1 %vm48_vm0, %v35_v13 }
  0x10   :  { %532 = vmatpush3.msra.mxu1 %v188_v10  ;;  %552 = vmatpush3.msra.mxu0 %v312_v11 }
  0x11   :  { %521 = vmatmul.mubr.msk.f32.gmra.mxu0 %vm48_vm0, %v32_v14  ;;  %527 = vmatmul.mubr.msk.f32.gmra.mxu1 %vm48_vm0, %v36_v15 }
  0x12   :  { %533 = vmatprep.subr.mxu1 %v187_v16  ;;  %553 = vmatprep.subr.mxu0 %v311_v17 }
  0x13   :  { %534 = vmatpush3.msra.mxu1 %v187_v16  ;;  %554 = vmatpush3.msra.mxu0 %v311_v17 }
  0x14   :  { %535 = vmatprep.subr.mxu1 %v186_v18  ;;  %555 = vmatprep.subr.mxu0 %v310_v19 }
  0x15   :  { %536 = vmatpush3.msra.mxu1 %v186_v18  ;;  %537 = vmatprep.mubr.msk.f32.mxu1 %vm48_vm0, %v29_v4 }
  0x16   :  { %556 = vmatpush3.msra.mxu0 %v310_v19  ;;  %557 = vmatprep.mubr.msk.f32.mxu0 %vm48_vm0, %v29_v4 }
  0x17   :  { %538 = vmatmul.mubr.msk.f32.vlgmr.msra.gmra.mxu1 %vm48_vm0, %v30_v6  ;;  %558 = vmatmul.mubr.msk.f32.vlgmr.msra.gmra.mxu0 %vm48_vm0, %v30_v6 }
  0x18   :  { %540 = vmatprep.mubr.msk.f32.mxu1 %vm48_vm0, %v31_v12  ;;  %560 = vmatprep.mubr.msk.f32.mxu0 %vm48_vm0, %v31_v12 }
  0x1b   :  { %541 = vmatmul.mubr.msk.f32.gmra.mxu1 %vm48_vm0, %v32_v14  ;;  %561 = vmatmul.mubr.msk.f32.gmra.mxu0 %vm48_vm0, %v32_v14 }
  0x1c   :  { %543 = vmatprep.mubr.msk.f32.mxu1 %vm48_vm0, %v33_v5  ;;  %563 = vmatprep.mubr.msk.f32.mxu0 %vm48_vm0, %v33_v5 }
  0x1f   :  { %544 = vmatmul.mubr.msk.f32.gmra.mxu1 %vm48_vm0, %v34_v7  ;;  %564 = vmatmul.mubr.msk.f32.gmra.mxu0 %vm48_vm0, %v34_v7 }
  0x20   :  { %546 = vmatprep.mubr.msk.f32.mxu1 %vm48_vm0, %v35_v13  ;;  %566 = vmatprep.mubr.msk.f32.mxu0 %vm48_vm0, %v35_v13 }
  0x23   :  { %547 = vmatmul.mubr.msk.f32.gmra.mxu1 %vm48_vm0, %v36_v15  ;;  %567 = vmatmul.mubr.msk.f32.gmra.mxu0 %vm48_vm0, %v36_v15 }
  0xcb   :  { %v519_v21 = vpop.f32.mrf.mxu0  ;;  %v525_v22 = vpop.f32.mrf.mxu1 }
  0xcc   :  { %v145_v23 = vadd.f32 %v519_v21, %v446_v20  ;;  %v165_v24 = vadd.f32 %v525_v22, %v446_v20 }
  0xcd   :  { %v139_v25 = vpop.f32.mrf.mxu0  ;;  %v159_v26 = vpop.f32.mrf.mxu1 }
  0xce   :  { %179 = vst.msk [vmem:[%s821_s7 + $0x8] sm:$0xff] %vm48_vm0, %v145_v23  ;;  %183 = vst.msk [vmem:[%s821_s7 + $0x28] sm:$0xff] %vm48_vm0, %v165_v24  ;;  %v140_v27 = vadd.f32 %v446_v20, %v139_v25  ;;  %v160_v28 = vadd.f32 %v446_v20, %v159_v26 }
  0xd0   :  { %178 = vst.msk [vmem:[%s821_s7] sm:$0xff] %vm48_vm0, %v140_v27  ;;  %182 = vst.msk [vmem:[%s821_s7 + $0x20] sm:$0xff] %vm48_vm0, %v160_v28 }
  0xd1   :  { %v522_v29 = vpop.f32.mrf.mxu0  ;;  %v528_v30 = vpop.f32.mrf.mxu1 }
  0xd2   :  { %v155_v31 = vadd.f32 %v522_v29, %v446_v20  ;;  %v175_v32 = vadd.f32 %v528_v30, %v446_v20 }
  0xd3   :  { %v149_v33 = vpop.f32.mrf.mxu0  ;;  %v169_v34 = vpop.f32.mrf.mxu1 }
  0xd4   :  { %181 = vst.msk [vmem:[%s821_s7 + $0x18] sm:$0xff] %vm48_vm0, %v155_v31  ;;  %185 = vst.msk [vmem:[%s821_s7 + $0x38] sm:$0xff] %vm48_vm0, %v175_v32  ;;  %v150_v35 = vadd.f32 %v446_v20, %v149_v33  ;;  %v170_v36 = vadd.f32 %v446_v20, %v169_v34 }
  0xd6   :  { %180 = vst.msk [vmem:[%s821_s7 + $0x10] sm:$0xff] %vm48_vm0, %v150_v35  ;;  %184 = vst.msk [vmem:[%s821_s7 + $0x30] sm:$0xff] %vm48_vm0, %v170_v36 }
  0xd7   :  { %v539_v39 = vpop.f32.mrf.mxu1  ;;  %v559_v40 = vpop.f32.mrf.mxu0 }
  0xd8   :  { %v269_v41 = vadd.f32 %v539_v39, %v455_v37  ;;  %v393_v42 = vadd.f32 %v559_v40, %v464_v38 }
  0xd9   :  { %v263_v43 = vpop.f32.mrf.mxu1  ;;  %v387_v44 = vpop.f32.mrf.mxu0 }
  0xda   :  { %303 = vst.msk [vmem:[%s824_s8 + $0x8] sm:$0xff] %vm48_vm0, %v269_v41  ;;  %427 = vst.msk [vmem:[%s825_s9 + $0x8] sm:$0xff] %vm48_vm0, %v393_v42  ;;  %v264_v45 = vadd.f32 %v455_v37, %v263_v43  ;;  %v388_v46 = vadd.f32 %v464_v38, %v387_v44 }
  0xdb   :  { %v542_v47 = vpop.f32.mrf.mxu1  ;;  %v562_v48 = vpop.f32.mrf.mxu0 }
  0xdc   :  { %302 = vst.msk [vmem:[%s824_s8] sm:$0xff] %vm48_vm0, %v264_v45  ;;  %426 = vst.msk [vmem:[%s825_s9] sm:$0xff] %vm48_vm0, %v388_v46  ;;  %v279_v49 = vadd.f32 %v542_v47, %v455_v37  ;;  %v403_v50 = vadd.f32 %v562_v48, %v464_v38 }
  0xdd   :  { %v273_v51 = vpop.f32.mrf.mxu1  ;;  %v397_v52 = vpop.f32.mrf.mxu0 }
  0xde   :  { %305 = vst.msk [vmem:[%s824_s8 + $0x18] sm:$0xff] %vm48_vm0, %v279_v49  ;;  %429 = vst.msk [vmem:[%s825_s9 + $0x18] sm:$0xff] %vm48_vm0, %v403_v50  ;;  %v274_v53 = vadd.f32 %v455_v37, %v273_v51  ;;  %v398_v54 = vadd.f32 %v464_v38, %v397_v52 }
  0xdf   :  { %v545_v55 = vpop.f32.mrf.mxu1  ;;  %v565_v56 = vpop.f32.mrf.mxu0 }
  0xe0   :  { %304 = vst.msk [vmem:[%s824_s8 + $0x10] sm:$0xff] %vm48_vm0, %v274_v53  ;;  %428 = vst.msk [vmem:[%s825_s9 + $0x10] sm:$0xff] %vm48_vm0, %v398_v54  ;;  %v289_v57 = vadd.f32 %v545_v55, %v455_v37  ;;  %v413_v58 = vadd.f32 %v565_v56, %v464_v38 }
  0xe1   :  { %v283_v59 = vpop.f32.mrf.mxu1  ;;  %v407_v60 = vpop.f32.mrf.mxu0 }
  0xe2   :  { %307 = vst.msk [vmem:[%s824_s8 + $0x28] sm:$0xff] %vm48_vm0, %v289_v57  ;;  %431 = vst.msk [vmem:[%s825_s9 + $0x28] sm:$0xff] %vm48_vm0, %v413_v58  ;;  %v284_v61 = vadd.f32 %v455_v37, %v283_v59  ;;  %v408_v62 = vadd.f32 %v464_v38, %v407_v60 }
  0xe3   :  { %v548_v63 = vpop.f32.mrf.mxu1  ;;  %v568_v0 = vpop.f32.mrf.mxu0 }
  0xe4   :  { %306 = vst.msk [vmem:[%s824_s8 + $0x20] sm:$0xff] %vm48_vm0, %v284_v61  ;;  %430 = vst.msk [vmem:[%s825_s9 + $0x20] sm:$0xff] %vm48_vm0, %v408_v62  ;;  %v299_v1 = vadd.f32 %v548_v63, %v455_v37  ;;  %v423_v2 = vadd.f32 %v568_v0, %v464_v38 }
  0xe5   :  { %v293_v3 = vpop.f32.mrf.mxu1  ;;  %v417_v4 = vpop.f32.mrf.mxu0 }
  0xe6   :  { %309 = vst.msk [vmem:[%s824_s8 + $0x38] sm:$0xff] %vm48_vm0, %v299_v1  ;;  %433 = vst.msk [vmem:[%s825_s9 + $0x38] sm:$0xff] %vm48_vm0, %v423_v2  ;;  %v294_v5 = vadd.f32 %v455_v37, %v293_v3  ;;  %v418_v6 = vadd.f32 %v464_v38, %v417_v4 }
  0xe8   :  { %308 = vst.msk [vmem:[%s824_s8 + $0x30] sm:$0xff] %vm48_vm0, %v294_v5  ;;  %432 = vst.msk [vmem:[%s825_s9 + $0x30] sm:$0xff] %vm48_vm0, %v418_v6 }

</bundles_post_ra>
